<compile_context>
chip_gen: v5e
topology: v5e:2x2
jax: 0.10.0
libtpu: 0.0.40
codegen_flags: <defaults>
</compile_context>

<pallas_src>
import functools

import jax
import jax.numpy as jnp
from jax.experimental import pallas as pl
from jax.experimental.pallas import tpu as pltpu

EPSILON = 1.0                       # matches the PyTorch module default
LANES = 128
TARGET_BLOCK_BYTES = 4 * 1024 * 1024    # ~4 MiB per input block
VMEM_LIMIT_BYTES = 48 * 1024 * 1024     # 3 inputs x 2 bufs x 4 MiB + scratch


def _partial_kernel(d_ref, w_ref, m_ref, num_ref, den_ref, num_acc, den_acc,
                    *, tile_r, rows_in_last_block):
    """Grid = (B, R_blocks).  Per-sample masked-L2 partial sums.

    d/w/m blocks: (1, tile_r, 128).  num/den output blocks: (1, 1, 128),
    resident across the reduction (last) grid axis; accumulation happens in
    f32 VMEM scratch and is flushed once on the final reduction step.
    """
    r = pl.program_id(1)
    nr = pl.num_programs(1)

    @pl.when(r == 0)
    def _():
        num_acc[...] = jnp.zeros_like(num_acc)
        den_acc[...] = jnp.zeros_like(den_acc)

    def accumulate(d, w, m):
        diff = d - w
        num_acc[...] += jnp.sum(m * diff * diff, axis=1, keepdims=True)
        den_acc[...] += jnp.sum(m * (d * d + w * w), axis=1, keepdims=True)

    # Casts happen in VMEM (free VPU casts); HBM traffic stays at native width.
    d = d_ref[...].astype(jnp.float32)
    w = w_ref[...].astype(jnp.float32)
    m = m_ref[...].astype(jnp.float32)

    if rows_in_last_block == tile_r:
        # Every block is full: no tail-masking code is emitted at all.
        accumulate(d, w, m)
    else:
        @pl.when(r < nr - 1)
        def _():
            accumulate(d, w, m)

        @pl.when(r == nr - 1)
        def _():
            # Logical (grid) padding: the last block extends past the real
            # rows.  Zero d, w AND m so neither num nor den sees garbage
            # (a select never propagates NaN/Inf from the masked-off lanes).
            valid = (jax.lax.broadcasted_iota(jnp.int32, (1, tile_r, 1), 1)
                     < rows_in_last_block)
            accumulate(jnp.where(valid, d, 0.0),
                       jnp.where(valid, w, 0.0),
                       jnp.where(valid, m, 0.0))

    @pl.when(r == nr - 1)
    def _():
        num_ref[...] = num_acc[...]
        den_ref[...] = den_acc[...]


def _sublane_align(*dtypes):
    """Sublane alignment for the narrowest dtype: f32->8, bf16->16, int8/bool->32."""
    min_itemsize = min(jnp.dtype(dt).itemsize for dt in dtypes)
    return max(8, 32 // max(1, min_itemsize))


def normalized_weighted_masked_l2_loss(depth_maps, warped_depth_maps,
                                       intersect_masks, translations,
                                       epsilon=EPSILON,
                                       target_block_bytes=TARGET_BLOCK_BYTES):
    """depth_maps / warped_depth_maps / intersect_masks: (B, C, H, W)
       translations: (B, 3) (or anything reshapeable to (-1, 3))."""
    B = depth_maps.shape[0]
    chw = 1
    for s in depth_maps.shape[1:]:
        chw *= s

    d = depth_maps.reshape(B, chw)
    w = warped_depth_maps.reshape(B, chw)
    m = intersect_masks.reshape(B, chw)

    # --- lane-dense (B, R, 128) layout ------------------------------------
    # Free (no-copy) reshape when chw is a multiple of 128 (the common case).
    # Otherwise pad only up to the next lane multiple (< 128 elems/sample);
    # zero padding is exact because d, w and m are all zero-padded together.
    rem = chw % LANES
    if rem:
        pad = LANES - rem
        d = jnp.pad(d, ((0, 0), (0, pad)))
        w = jnp.pad(w, ((0, 0), (0, pad)))
        m = jnp.pad(m, ((0, 0), (0, pad)))
    r_rows = (chw + LANES - 1) // LANES
    d3 = d.reshape(B, r_rows, LANES)
    w3 = w.reshape(B, r_rows, LANES)
    m3 = m.reshape(B, r_rows, LANES)

    # --- balanced, dtype-aligned tiles (padding can never balloon) ---------
    max_itemsize = max(jnp.dtype(x.dtype).itemsize for x in (d3, w3, m3))
    align = _sublane_align(d3.dtype, w3.dtype, m3.dtype)
    target_rows = max(align, target_block_bytes // (LANES * max_itemsize))
    n_blocks = pl.cdiv(r_rows, target_rows)
    tile_r = pl.cdiv(r_rows, n_blocks)
    tile_r = ((tile_r + align - 1) // align) * align
    if tile_r >= r_rows:
        tile_r = r_rows                 # single block == full array dims
    n_r_blocks = pl.cdiv(r_rows, tile_r)
    rows_in_last_block = r_rows - (n_r_blocks - 1) * tile_r

    grid = (B, n_r_blocks)
    in_spec = pl.BlockSpec((1, tile_r, LANES), lambda b, r: (b, r, 0))
    acc_spec = pl.BlockSpec((1, 1, LANES), lambda b, r: (b, 0, 0))

    bytes_in = sum(x.size * x.dtype.itemsize for x in (d3, w3, m3))
    cost = pl.CostEstimate(flops=9 * B * r_rows * LANES,
                           transcendentals=0,
                           bytes_accessed=bytes_in + 2 * B * LANES * 4)

    # TODO(synk): on v7x with tiny batch (B == 1), split the reduction axis
    # into an outer "parallel" chunk so the second TensorCore gets work.
    num_p, den_p = pl.pallas_call(
        functools.partial(_partial_kernel, tile_r=tile_r,
                          rows_in_last_block=rows_in_last_block),
        out_shape=(jax.ShapeDtypeStruct((B, 1, LANES), jnp.float32),
                   jax.ShapeDtypeStruct((B, 1, LANES), jnp.float32)),
        grid_spec=pltpu.PrefetchScalarGridSpec(
            num_scalar_prefetch=0,
            grid=grid,
            in_specs=[in_spec, in_spec, in_spec],
            out_specs=(acc_spec, acc_spec),
            scratch_shapes=[pltpu.VMEM((1, 1, LANES), jnp.float32),
                            pltpu.VMEM((1, 1, LANES), jnp.float32)]),
        compiler_params=pltpu.CompilerParams(
            dimension_semantics=("parallel", "arbitrary"),
            vmem_limit_bytes=VMEM_LIMIT_BYTES),
        cost_estimate=cost,
    )(d3, w3, m3)

    # --- O(B) epilogue in plain jnp (saves a launch + tiny HBM round trip) --
    num = jnp.sum(num_p, axis=(1, 2))                           # (B,)
    den = 0.5 * jnp.sum(den_p, axis=(1, 2)) + epsilon           # (B,)
    t = translations.reshape(B, 3).astype(jnp.float32)
    norms = jnp.sqrt(jnp.sum(t * t, axis=1))                    # (B,)
    weights = 1.0 / (1e-8 + norms)                              # (B,)
    per_sample = num / den                                      # (B,)
    return jnp.sum(per_sample * weights) / jnp.sum(weights)


def _reference(depth_maps, warped_depth_maps, intersect_masks, translations,
               epsilon=EPSILON):
    B = depth_maps.shape[0]
    t = translations.reshape(B, 3).astype(jnp.float32)
    norms = jnp.sqrt(jnp.sum(t * t, axis=1))
    weights = 1.0 / (1e-8 + norms)
    d = depth_maps.astype(jnp.float32)
    w = warped_depth_maps.astype(jnp.float32)
    m = intersect_masks.astype(jnp.float32)
    diff = d - w
    num = jnp.sum(m * diff * diff, axis=(1, 2, 3))
    den = 0.5 * jnp.sum(m * (d * d + w * w), axis=(1, 2, 3)) + epsilon
    loss = num / den
    return jnp.sum(loss * weights) / jnp.sum(weights)


if __name__ == "__main__":
    key = jax.random.PRNGKey(0)
    k1, k2, k3, k4 = jax.random.split(key, 4)

    # Test 1: nominal small shape (chw = 4*16*16 = 1024, single full block).
    B, C, H, W = 2, 4, 16, 16
    depth_maps = jax.random.uniform(k1, (B, C, H, W), jnp.float32, 0.5, 3.0)
    warped_depth_maps = jax.random.uniform(k2, (B, C, H, W), jnp.float32, 0.5, 3.0)
    intersect_masks = (jax.random.uniform(k3, (B, C, H, W)) > 0.3).astype(jnp.float32)
    translations = jax.random.normal(k4, (B, 3), jnp.float32)

    loss = normalized_weighted_masked_l2_loss(
        depth_maps, warped_depth_maps, intersect_masks, translations)
    loss = jax.block_until_ready(loss)
    ref = _reference(depth_maps, warped_depth_maps, intersect_masks, translations)
    assert jnp.allclose(loss, ref, rtol=1e-5, atol=1e-6), (loss, ref)

    # Test 2: exercises the in-kernel ragged-tail masking path
    # (chw = 5*32*32 -> r_rows = 40; forced tile_r = 16 -> last block has 8 rows).
    k5, k6, k7, k8 = jax.random.split(jax.random.PRNGKey(1), 4)
    B2, C2, H2, W2 = 2, 5, 32, 32
    d2 = jax.random.uniform(k5, (B2, C2, H2, W2), jnp.float32, 0.5, 3.0)
    w2 = jax.random.uniform(k6, (B2, C2, H2, W2), jnp.float32, 0.5, 3.0)
    m2 = (jax.random.uniform(k7, (B2, C2, H2, W2)) > 0.3).astype(jnp.float32)
    t2 = jax.random.normal(k8, (B2, 3), jnp.float32)
    loss2 = normalized_weighted_masked_l2_loss(
        d2, w2, m2, t2, target_block_bytes=16 * LANES * 4)
    loss2 = jax.block_until_ready(loss2)
    ref2 = _reference(d2, w2, m2, t2)
    assert jnp.allclose(loss2, ref2, rtol=1e-5, atol=1e-6), (loss2, ref2)

    print("KERNEL_OK")
</pallas_src>

<mosaic_0001>
module attributes {stable_mosaic.version = 11 : i64} {
  func.func @_partial_kernel(%arg0: i32, %arg1: i32, %arg2: memref<1x8x128xf32, #tpu.memory_space<vmem>>, %arg3: memref<1x8x128xf32, #tpu.memory_space<vmem>>, %arg4: memref<1x8x128xf32, #tpu.memory_space<vmem>>, %arg5: memref<1x1x128xf32, #tpu.memory_space<vmem>>, %arg6: memref<1x1x128xf32, #tpu.memory_space<vmem>>, %arg7: memref<1x1x128xf32, #tpu.memory_space<vmem>>, %arg8: memref<1x1x128xf32, #tpu.memory_space<vmem>>) attributes {dimension_semantics = [#tpu.dimension_semantics<parallel>, #tpu.dimension_semantics<arbitrary>], iteration_bounds = array<i64: 2, 1>, scalar_prefetch = 0 : i64, scratch_operands = 2 : i64, tpu.core_type = #tpu.core_type<tc>, window_params = [{transform_indices = @transform_0, window_bounds = array<i64: 1, 8, 128>}, {transform_indices = @transform_1, window_bounds = array<i64: 1, 8, 128>}, {transform_indices = @transform_2, window_bounds = array<i64: 1, 8, 128>}, {transform_indices = @transform_3, window_bounds = array<i64: 1, 1, 128>}, {transform_indices = @transform_4, window_bounds = array<i64: 1, 1, 128>}]} {
    %c0_i32 = arith.constant 0 : i32
    %0 = arith.cmpi eq, %arg1, %c0_i32 : i32
    %1 = arith.extui %0 : i1 to i32
    %c0_i32_0 = arith.constant 0 : i32
    %2 = arith.cmpi ne, %1, %c0_i32_0 : i32
    scf.if %2 {
      %cst_24 = arith.constant 0.000000e+00 : f32
      %26 = vector.broadcast %cst_24 : f32 to vector<1x1x128xf32>
      %c0_25 = arith.constant 0 : index
      %c0_26 = arith.constant 0 : index
      %c0_27 = arith.constant 0 : index
      %27 = vector.load %arg7[%c0_25, %c0_26, %c0_27] : memref<1x1x128xf32, #tpu.memory_space<vmem>>, vector<1x1x128xf32>
      tpu.vector_store %arg7[%c0_25, %c0_26, %c0_27], %26 {strides = array<i32>} : memref<1x1x128xf32, #tpu.memory_space<vmem>>, vector<1x1x128xf32>,
      %cst_28 = arith.constant 0.000000e+00 : f32
      %28 = vector.broadcast %cst_28 : f32 to vector<1x1x128xf32>
      %c0_29 = arith.constant 0 : index
      %c0_30 = arith.constant 0 : index
      %c0_31 = arith.constant 0 : index
      %29 = vector.load %arg8[%c0_29, %c0_30, %c0_31] : memref<1x1x128xf32, #tpu.memory_space<vmem>>, vector<1x1x128xf32>
      tpu.vector_store %arg8[%c0_29, %c0_30, %c0_31], %28 {strides = array<i32>} : memref<1x1x128xf32, #tpu.memory_space<vmem>>, vector<1x1x128xf32>,
    } else {
    }
    %c0 = arith.constant 0 : index
    %c0_1 = arith.constant 0 : index
    %c0_2 = arith.constant 0 : index
    %3 = vector.load %arg2[%c0, %c0_1, %c0_2] : memref<1x8x128xf32, #tpu.memory_space<vmem>>, vector<1x8x128xf32>
    %c0_3 = arith.constant 0 : index
    %c0_4 = arith.constant 0 : index
    %c0_5 = arith.constant 0 : index
    %4 = vector.load %arg3[%c0_3, %c0_4, %c0_5] : memref<1x8x128xf32, #tpu.memory_space<vmem>>, vector<1x8x128xf32>
    %c0_6 = arith.constant 0 : index
    %c0_7 = arith.constant 0 : index
    %c0_8 = arith.constant 0 : index
    %5 = vector.load %arg4[%c0_6, %c0_7, %c0_8] : memref<1x8x128xf32, #tpu.memory_space<vmem>>, vector<1x8x128xf32>
    %6 = arith.subf %3, %4 : vector<1x8x128xf32>
    %c0_9 = arith.constant 0 : index
    %c0_10 = arith.constant 0 : index
    %c0_11 = arith.constant 0 : index
    %7 = vector.load %arg7[%c0_9, %c0_10, %c0_11] : memref<1x1x128xf32, #tpu.memory_space<vmem>>, vector<1x1x128xf32>
    %8 = arith.mulf %5, %6 : vector<1x8x128xf32>
    %9 = arith.mulf %8, %6 : vector<1x8x128xf32>
    %cst = arith.constant dense<0.000000e+00> : vector<1x128xf32>
    %10 = vector.multi_reduction <add>, %9, %cst [1] : vector<1x8x128xf32> to vector<1x128xf32>
    %11 = vector.shape_cast %10 : vector<1x128xf32> to vector<1x1x128xf32>
    %12 = arith.addf %7, %11 : vector<1x1x128xf32>
    %c0_12 = arith.constant 0 : index
    %c0_13 = arith.constant 0 : index
    %c0_14 = arith.constant 0 : index
    %13 = vector.load %arg7[%c0_12, %c0_13, %c0_14] : memref<1x1x128xf32, #tpu.memory_space<vmem>>, vector<1x1x128xf32>
    tpu.vector_store %arg7[%c0_12, %c0_13, %c0_14], %12 {strides = array<i32>} : memref<1x1x128xf32, #tpu.memory_space<vmem>>, vector<1x1x128xf32>,
    %c0_15 = arith.constant 0 : index
    %c0_16 = arith.constant 0 : index
    %c0_17 = arith.constant 0 : index
    %14 = vector.load %arg8[%c0_15, %c0_16, %c0_17] : memref<1x1x128xf32, #tpu.memory_space<vmem>>, vector<1x1x128xf32>
    %15 = arith.mulf %3, %3 : vector<1x8x128xf32>
    %16 = arith.mulf %4, %4 : vector<1x8x128xf32>
    %17 = arith.addf %15, %16 : vector<1x8x128xf32>
    %18 = arith.mulf %5, %17 : vector<1x8x128xf32>
    %cst_18 = arith.constant dense<0.000000e+00> : vector<1x128xf32>
    %19 = vector.multi_reduction <add>, %18, %cst_18 [1] : vector<1x8x128xf32> to vector<1x128xf32>
    %20 = vector.shape_cast %19 : vector<1x128xf32> to vector<1x1x128xf32>
    %21 = arith.addf %14, %20 : vector<1x1x128xf32>
    %c0_19 = arith.constant 0 : index
    %c0_20 = arith.constant 0 : index
    %c0_21 = arith.constant 0 : index
    %22 = vector.load %arg8[%c0_19, %c0_20, %c0_21] : memref<1x1x128xf32, #tpu.memory_space<vmem>>, vector<1x1x128xf32>
    tpu.vector_store %arg8[%c0_19, %c0_20, %c0_21], %21 {strides = array<i32>} : memref<1x1x128xf32, #tpu.memory_space<vmem>>, vector<1x1x128xf32>,
    %c0_i32_22 = arith.constant 0 : i32
    %23 = arith.cmpi eq, %arg1, %c0_i32_22 : i32
    %24 = arith.extui %23 : i1 to i32
    %c0_i32_23 = arith.constant 0 : i32
    %25 = arith.cmpi ne, %24, %c0_i32_23 : i32
    scf.if %25 {
      %c0_24 = arith.constant 0 : index
      %c0_25 = arith.constant 0 : index
      %c0_26 = arith.constant 0 : index
      %26 = vector.load %arg7[%c0_24, %c0_25, %c0_26] : memref<1x1x128xf32, #tpu.memory_space<vmem>>, vector<1x1x128xf32>
      %c0_27 = arith.constant 0 : index
      %c0_28 = arith.constant 0 : index
      %c0_29 = arith.constant 0 : index
      %27 = vector.load %arg5[%c0_27, %c0_28, %c0_29] : memref<1x1x128xf32, #tpu.memory_space<vmem>>, vector<1x1x128xf32>
      tpu.vector_store %arg5[%c0_27, %c0_28, %c0_29], %26 {strides = array<i32>} : memref<1x1x128xf32, #tpu.memory_space<vmem>>, vector<1x1x128xf32>,
      %c0_30 = arith.constant 0 : index
      %c0_31 = arith.constant 0 : index
      %c0_32 = arith.constant 0 : index
      %28 = vector.load %arg8[%c0_30, %c0_31, %c0_32] : memref<1x1x128xf32, #tpu.memory_space<vmem>>, vector<1x1x128xf32>
      %c0_33 = arith.constant 0 : index
      %c0_34 = arith.constant 0 : index
      %c0_35 = arith.constant 0 : index
      %29 = vector.load %arg6[%c0_33, %c0_34, %c0_35] : memref<1x1x128xf32, #tpu.memory_space<vmem>>, vector<1x1x128xf32>
      tpu.vector_store %arg6[%c0_33, %c0_34, %c0_35], %28 {strides = array<i32>} : memref<1x1x128xf32, #tpu.memory_space<vmem>>, vector<1x1x128xf32>,
    } else {
    }
    return
  }
  func.func @transform_0(%arg0: i32, %arg1: i32) -> (i32, i32, i32) {
    %c0_i32 = arith.constant 0 : i32
    %c0_i32_0 = arith.constant 0 : i32
    return %arg0, %arg1, %c0_i32 : i32, i32, i32
  }
  func.func @transform_1(%arg0: i32, %arg1: i32) -> (i32, i32, i32) {
    %c0_i32 = arith.constant 0 : i32
    %c0_i32_0 = arith.constant 0 : i32
    return %arg0, %arg1, %c0_i32 : i32, i32, i32
  }
  func.func @transform_2(%arg0: i32, %arg1: i32) -> (i32, i32, i32) {
    %c0_i32 = arith.constant 0 : i32
    %c0_i32_0 = arith.constant 0 : i32
    return %arg0, %arg1, %c0_i32 : i32, i32, i32
  }
  func.func @transform_3(%arg0: i32, %arg1: i32) -> (i32, i32, i32) {
    %c0_i32 = arith.constant 0 : i32
    %c0_i32_0 = arith.constant 0 : i32
    %c0_i32_1 = arith.constant 0 : i32
    return %arg0, %c0_i32, %c0_i32_0 : i32, i32, i32
  }
  func.func @transform_4(%arg0: i32, %arg1: i32) -> (i32, i32, i32) {
    %c0_i32 = arith.constant 0 : i32
    %c0_i32_0 = arith.constant 0 : i32
    %c0_i32_1 = arith.constant 0 : i32
    return %arg0, %c0_i32, %c0_i32_0 : i32, i32, i32
  }
}

</mosaic_0001>

<bundles_post_ra>
// kernel: tpu_custom_call.1
= control target key start
LH: loop header
LB: loop body
LE: loop exit
PB: predicated region body
PF: predicated region fallthrough
CT: control target
= control target key end

     0   :  { %s1050_s0 = inlined_call_operand.hbm [shape: f32[2,8,128], index: 0, kind: input, shape index: {}]   ;;  %s1051_s1 = inlined_call_operand.hbm [shape: f32[2,8,128], index: 1, kind: input, shape index: {}]   ;;  %s1052_s2 = inlined_call_operand.hbm [shape: f32[2,8,128], index: 2, kind: input, shape index: {}]   ;;  %s1053_s3 = inlined_call_operand.hbm [shape: f32[2,1,128], index: 3, kind: output, shape index: {0}]   ;;  %s1054_s4 = inlined_call_operand.hbm [shape: f32[2,1,128], index: 4, kind: output, shape index: {1}]  }
   0x1   :  { %1058 = sst [smem:[#allocation21_spill]] %s1051_s1 }
   0x2   :  { %10 = vsyncpa [#allocation5], 0 }
   0x3   :  { %12 = vsyncpa [#allocation5 + $0x1], 0 }
   0x4   :  { %13 = vsyncpa [#allocation8], 0 }
   0x5   :  { %15 = vsyncpa [#allocation8 + $0x1], 0 }
   0x6   :  { %16 = vsyncpa [#allocation6], 0 }
   0x7   :  { %18 = vsyncpa [#allocation6 + $0x1], 0 }
   0x8   :  { %19 = vsyncpa [#allocation12], 0 }
   0x9   :  { %21 = vsyncpa [#allocation12 + $0x1], 0  ;;  %s869_s15 = smov 0   ;;  %s871_s16 = smov 0  }
   0xa   :  { %s873_s17 = smov 0   ;;  %s875_s18 = smov 0  }
   0xb   :  { %s877_s19 = smov 0   ;;  %s879_s20 = smov 0  }
   0xc LB: > { %1059 = sst [smem:[#allocation17_spill]] %s829_s17  ;;  %s900_s21 = sadd.s32 4294967295, %s841_s20   ;;  %s841_s20 = sphi %s879_s20, %s27_s20   ;;  %s837_s19 = sphi %s877_s19, %s1073_s19   ;;  %s833_s18 = sphi %s875_s18, %s1072_s18   ;;  %s829_s17 = sphi %s873_s17, %s1071_s17   ;;  %s825_s16 = sphi %s871_s16, %s1075_s16   ;;  %s821_s15 = sphi %s869_s15, %s1074_s15  }
   0xd   : > { %1060 = sst [smem:[#allocation18_spill]] %s837_s19  ;;  %s540_s22 = sadd.s32 4294967294, %s841_s20  }
   0xe   : > { %s39_s23 = sadd.s32 1, %s837_s19  ;;  %s48_s24 = sadd.s32 1, %s829_s17 }
   0xf   : > { %p41_p0 = scmp.ge.s32.totalorder %s39_s23, 2  ;;  %p55_p1 = scmp.ne.s32.totalorder %s829_s17, %s825_s16 }
  0x10   : > { %p56_p2 = scmp.eq.s32.totalorder %s841_s20, 0  ;;  %p61_p3 = scmp.ne.s32.totalorder %s825_s16, %s821_s15 }
  0x11   : > { %s1077_s23 = smov (%p41_p0, %s39_s23), 0  ;;  %p62_p5 = scmp.eq.s32.totalorder %s900_s21, 0 }
  0x12   : > { %1061 = sst [smem:[#allocation19_spill]] %s1077_s23  ;;  %p912_p4 = por %p56_p2, %p55_p1 }
  0x13   : > { %s43_s26 = ssub.s32 %s837_s19, %s1077_s23  ;;  %p141_p6 = scmp.eq.s32.totalorder %s900_s21, 1 }
  0x14   : > { %p46_p7 = scmp.eq.s32.totalorder %s43_s26, 0  ;;  %p920_p8 = por %p62_p5, %p61_p3 }
  0x15   : > { %p924_p9 = por %p141_p6, %p55_p1  ;;  %p147_p10 = scmp.eq.s32.totalorder %s540_s22, 1 }
  0x16   : > { %s929_s29 = scalar_select %p46_p7, %s829_s17, %s48_s24  }
  0x17   : > { %p931_p11 = por %p147_p10, %p61_p3  ;;  %p542_p12 = scmp.ge.s32.totalorder %s841_s20, 2 }
  0x18   : > { %1065 = sst [smem:[#allocation20_spill]] %s929_s29  ;;  %p582_p13 = scmp.lt.s32.totalorder %s841_s20, 2 }
  0x19   : > { %s193_s5 = sand.u32 1, %s829_s17   ;;  %s544_s7 = sshll.u32 %s837_s19, 3 }
  0x1a   : > { %s543_s6 = sshll.u32 %s193_s5, 3  ;;  %p941_p0 = pnand %p582_p13, %p912_p4 }
  0x1b   : > { %s213_s9 = sand.u32 1, %s841_s20   ;;  %s1068_s1 = sld [smem:[#allocation21_spill]] }
  0x1c   : > { %s217_s14 = scalar_lea.vmem [#allocation7], %s543_s6  ;;  %s214_s24 = scalar_lea.sflag [#allocation8], %s213_s9 }
  0x1d   : > { %s226_s22 = sshll.u32 %s217_s14, 4  ;;  %p549_p1 = scmp.ge.s32.totalorder %s841_s20, 1  ;;  %s227_s22 = int_to_ptr.vmem [resolvable:$true] %s226_s22 }
  0x1e   : > { %p251_p2 = scmp.lt.s32.totalorder %s841_s20, 3  ;;  %s202_s10 = scalar_lea.hbm %s1050_s0, %s544_s7 }
  0x1f   : > { %s204_s11 = sshll.u32 %s202_s10, 4  ;;  %s194_s14 = scalar_lea.sflag [#allocation5], %s193_s5  ;;  %s205_s11 = int_to_ptr.hbm [resolvable:$true] %s204_s11 }
  0x20   : > { %p953_p3 = pnand %p549_p1, %p251_p2  ;;  %s237_s29 = scalar_lea.vmem [#allocation9], %s543_s6 }
  0x21   : > { %s222_s12 = scalar_lea.hbm %s1068_s1, %s544_s7  ;;  %s246_s17 = sshll.u32 %s237_s29, 4  ;;  %s247_s17 = int_to_ptr.vmem [resolvable:$true] %s246_s17 }
  0x22   : > { %s224_s13 = sshll.u32 %s222_s12, 4  ;;  %s197_s12 = scalar_lea.vmem [#allocation4], %s543_s6  ;;  %s225_s13 = int_to_ptr.hbm [resolvable:$true] %s224_s13 }
  0x23   : > { %571 = dma.hbm_to_vmem [thread:$0]  (!%p941_p0), %s225_s13, 128, %s227_s22, %s214_s24  }
  0x24   : > { %s206_s1 = sshll.u32 %s197_s12, 4  ;;  %s242_s22 = scalar_lea.hbm %s1052_s2, %s544_s7  ;;  %s207_s1 = int_to_ptr.vmem [resolvable:$true] %s206_s1 }
  0x25   : > { %568 = dma.hbm_to_vmem [thread:$0]  (!%p941_p0), %s205_s11, 128, %s207_s1, %s194_s14  }
  0x26   : > { %s244_s19 = sshll.u32 %s242_s22, 4  ;;  %255 = sbr.rel (%p953_p3) target bundleno = 92 (0x5c), region = 32  ;;  %s245_s19 = int_to_ptr.hbm [resolvable:$true] %s244_s19 }
  0x27   : > { %574 = dma.hbm_to_vmem [thread:$0]  (!%p941_p0), %s245_s19, 128, %s247_s17, %s214_s24  }
  0x28   : > { %s970_s23 = sand.u32 (!%p953_p3), 1, %s825_s16  }
  0x29   : > { %s550_s1 = sshll.u32 (!%p953_p3), %s970_s23, 3  ;;  %s258_s5 = scalar_lea.sflag (!%p953_p3), [#allocation5], %s970_s23 }
  0x2a   : > { %s261_s26 = scalar_lea.vmem (!%p953_p3), [#allocation4], %s550_s1 }
  0x2b   : > { %804 = dma.done.wait (%p920_p8), %s258_s5, 128  }
  0x2c   : > { %806 = vsyncadd (%p920_p8), %s258_s5, 4294967168  ;;  %s267_s17 = sand.u32 1, %s900_s21   ;;  %s271_s29 = scalar_lea.vmem [#allocation7], %s550_s1 }
  0x2d   : > { %s268_s19 = scalar_lea.sflag [#allocation8], %s267_s17 }
  0x2e   : > { %808 = dma.done.wait (%p920_p8), %s268_s19, 256  }
  0x2f   : > { %810 = vsyncadd (%p920_p8), %s268_s19, 4294967040  ;;  %v843_v0 = vmov 0.0   ;;  %v326_v1 = vld [vmem:[%s261_s26] sm:$0xff]  ;;  %v327_v2 = vld [vmem:[%s271_s29] sm:$0xff]  ;;  %s281_s6 = scalar_lea.vmem [#allocation9], %s550_s1  ;;  %s374_s7 = scalar_lea.hbm %s1053_s3, %s833_s18 }
  0x30   : > { %324 = vst [vmem:[#allocation2] sm:$0x1] %v843_v0  ;;  %v328_v3 = vld [vmem:[%s281_s6] sm:$0xff]  ;;  %v329_v4 = vsub.f32 %v326_v1, %v327_v2  ;;  %v342_v5 = vmul.f32 %v326_v1, %v326_v1  ;;  %v343_v6 = vmul.f32 %v327_v2, %v327_v2  ;;  %s387_s25 = scalar_lea.hbm %s1054_s4, %s833_s18  ;;  %s313_s10 = scalar_lea.vmem [#allocation10], %s970_s23 }
  0x31   : > { %325 = vst [vmem:[#allocation3] sm:$0x1] %v843_v0  ;;  %s376_s11 = sshll.u32 %s313_s10, 4  ;;  %s319_s12 = scalar_lea.vmem [#allocation11], %s970_s23  ;;  %s377_s11 = int_to_ptr.vmem [resolvable:$true] %s376_s11 }
  0x32   : > { %v331_v7 = vmul.f32 %v329_v4, %v328_v3  ;;  %v344_v8 = vadd.f32 %v343_v6, %v342_v5  ;;  %s993_s14 = sshll.u32 %s319_s12, 4  ;;  %s378_s9 = sshll.u32 %s374_s7, 4  ;;  %s390_s14 = int_to_ptr.vmem [resolvable:$true] %s993_s14  ;;  %s379_s9 = int_to_ptr.hbm [resolvable:$true] %s378_s9 }
  0x33   : > { %s995_s13 = sshll.u32 %s387_s25, 4  ;;  %s362_s18 = scalar_lea.sflag [#allocation6], %s970_s23  ;;  %s392_s13 = int_to_ptr.hbm [resolvable:$true] %s995_s13 }
  0x34   : > { %v332_v9 = vmul.f32 %v331_v7, %v329_v4  ;;  %v345_v10 = vmul.f32 %v344_v8, %v328_v3  ;;  %s737_s22 = sshra.s32 %s379_s9, 4  ;;  %s743_s17 = scalar_lea.hbm %s1053_s3, 2  ;;  %s738_s22 = int_to_ptr.hbm [resolvable:$true] %s737_s22 }
  0x35   : > { %s739_s1 = scalar_lea.hbm %s738_s22, 1  ;;  %p744_p7 = scmp.lt.s32.totalorder %s738_s22, %s1053_s3 }
  0x36   : > { %v333_v11 = vrot.slane %v332_v9, 4  ;;  %v346_v12 = vrot.slane %v345_v10, 4  ;;  %p740_p4 = scmp.ne.s32.totalorder %s738_s22, %s739_s1  ;;  %p745_p8 = scmp.lt.s32.totalorder %s743_s17, %s739_s1 }
  0x37   : > { %v330_v21 = vld [vmem:[#allocation2] sm:$0x1] }
  0x38   : > { %v334_v13 = vadd.f32 %v333_v11, %v332_v9  ;;  %v347_v14 = vadd.f32 %v346_v12, %v345_v10  ;;  %v341_v22 = vld [vmem:[#allocation3] sm:$0x1]  ;;  %p741_p5 = pnand %p740_p4, %p924_p9  ;;  %p746_p10 = por %p745_p8, %p744_p7 }
  0x3a   : > { %v335_v15 = vrot.slane %v334_v13, 2  ;;  %v348_v16 = vrot.slane %v347_v14, 2  ;;  %p742_p6 = pneg %p741_p5 }
  0x3c   : > { %v336_v17 = vadd.f32 %v335_v15, %v334_v13  ;;  %v349_v18 = vadd.f32 %v348_v16, %v347_v14  ;;  %p747_p13 = pnand %p746_p10, %p742_p6 }
  0x3e   : > { %v337_v19 = vrot.slane %v336_v17, 1  ;;  %v350_v20 = vrot.slane %v349_v18, 1 }
  0x40   : > { %v338_v23 = vadd.f32 %v337_v19, %v336_v17  ;;  %v351_v24 = vadd.f32 %v350_v20, %v349_v18 }
  0x42   : > { %v339_v25 = vadd.f32 %v338_v23, %v330_v21  ;;  %v352_v26 = vadd.f32 %v351_v24, %v341_v22 }
  0x44   : > { %340 = vst [vmem:[#allocation2] sm:$0x1] %v339_v25 }
  0x45   : > { %353 = vst [vmem:[#allocation3] sm:$0x1] %v352_v26 }
  0x4b   : > { %v357_v27 = vld [vmem:[#allocation2] sm:$0x1] }
  0x4c   : > { %358 = vst [vmem:[%s313_s10] sm:$0x1] %v357_v27  ;;  %v359_v28 = vld [vmem:[#allocation3] sm:$0x1] }
  0x4d   : > { %360 = vst [vmem:[%s319_s12] sm:$0x1] %v359_v28 }
  0x4e   : > { %750 = shalt.err (!%p747_p13)
}
  0x4f   : > { %561 = dma.vmem_to_hbm [thread:$0]  (%p924_p9), %s377_s11, 16, %s379_s9, %s362_s18  }
  0x50   : > { %s366_s6 = scalar_lea.sflag [#allocation12], %s970_s23  ;;  %s765_s21 = sshra.s32 %s392_s13, 4  ;;  %s766_s21 = int_to_ptr.hbm [resolvable:$true] %s765_s21 }
  0x51   : > { %s767_s27 = scalar_lea.hbm %s766_s21, 1  ;;  %s771_s24 = scalar_lea.hbm %s1054_s4, 2 }
  0x52   : > { %p768_p0 = scmp.ne.s32.totalorder %s766_s21, %s767_s27  ;;  %p772_p3 = scmp.lt.s32.totalorder %s766_s21, %s1054_s4 }
  0x53   : > { %p773_p4 = scmp.lt.s32.totalorder %s771_s24, %s767_s27 }
  0x54   : > { %p769_p1 = pnand %p768_p0, %p924_p9 }
  0x55   : > { %p774_p5 = por %p773_p4, %p772_p3 }
  0x56   : > { %p770_p2 = pneg %p769_p1 }
  0x58   : > { %p775_p6 = pnand %p774_p5, %p770_p2 }
  0x5a   : > { %778 = shalt.err (!%p775_p6)
}
  0x5b   : > { %562 = dma.vmem_to_hbm [thread:$0]  (%p924_p9), %s390_s14, 16, %s392_s13, %s366_s6  }
  0x5c PF: > { %s403_s23 = sand.u32 1, %s821_s15   ;;  %p576_p7 = pnand %p542_p12, %p931_p11 }
  0x5d   : > { %s404_s11 = scalar_lea.sflag [#allocation6], %s403_s23 }
  0x5e   : > { %p577_p8 = pneg %p576_p7 }
  0x60   : > { %812 = dma.done.wait (%p577_p8), %s404_s11, 16  }
  0x61   : > { %814 = vsyncadd (%p577_p8), %s404_s11, 4294967280  ;;  %s413_s12 = scalar_lea.sflag [#allocation12], %s403_s23 }
  0x62   : > { %816 = dma.done.wait (%p577_p8), %s413_s12, 16  }
  0x63   : > { %818 = vsyncadd (%p577_p8), %s413_s12, 4294967280  ;;  %s27_s20 = sadd.s32 1, %s841_s20   ;;  %s1070_s28 = sld [smem:[#allocation17_spill]] }
  0x64   : > { %p24_p10 = scmp.ge.s32.totalorder %s27_s20, 4   ;;  %s1071_s17 = sld [smem:[#allocation20_spill]] }
  0x65   : > { %s1072_s18 = sld [smem:[#allocation18_spill]]  ;;  %s1074_s15 = smov %s825_s16 }
  0x66   : > { %s1073_s19 = sld [smem:[#allocation19_spill]]  ;;  %26 = sbr.rel (!%p24_p10) target bundleno = 12 (0xc), region = 126 }
  0x69   : > { %s1075_s16 = smov %s1070_s28 }
  0x6b   :  { %418 = vsyncpa [#allocation5], 1 }
  0x6c   :  { %420 = vsyncpa [#allocation5 + $0x1], 1 }
  0x6d   :  { %421 = vsyncpa [#allocation8], 1 }
  0x6e   :  { %423 = vsyncpa [#allocation8 + $0x1], 1 }
  0x6f   :  { %424 = vsyncpa [#allocation6], 1 }
  0x70   :  { %426 = vsyncpa [#allocation6 + $0x1], 1 }
  0x71   :  { %427 = vsyncpa [#allocation12], 1 }
  0x72   :  { %429 = vsyncpa [#allocation12 + $0x1], 1 }

</bundles_post_ra>
